<compile_context>
chip_gen: v6e
topology: v6e:2x2x1
jax: 0.10.0
libtpu: 0.0.40
codegen_flags: <defaults>
</compile_context>

<pallas_src>
import functools

import jax
import jax.numpy as jnp
from jax.experimental import pallas as pl
from jax.experimental.pallas import tpu as pltpu


def resblock_kernel(x_ref, w1_ref, w2_ref, b1_ref, b2_ref, o_ref):
    # x_ref: (C, tl) f32 activation tile (kept f32 for the residual add).
    x = x_ref[...]
    # conv1 (BN1 scale folded into w1) + BN1 shift + relu
    h = jnp.dot(w1_ref[...], x.astype(w1_ref.dtype),
                preferred_element_type=jnp.float32)
    h = jnp.maximum(h + b1_ref[...], 0.0)
    # conv2 (BN2 scale folded into w2) + BN2 shift + residual add
    y = jnp.dot(w2_ref[...], h.astype(w2_ref.dtype),
                preferred_element_type=jnp.float32)
    o_ref[...] = (y + b2_ref[...] + x).astype(o_ref.dtype)


@functools.partial(jax.jit, static_argnames=("eps", "tl", "matmul_dtype"))
def resblock_pallas(x_ncl, w1, w2, g1, beta1, m1, v1, g2, beta2, m2, v2,
                    eps=1e-5, tl=1024, matmul_dtype=jnp.float32):
    """x_ncl: (B, C, L) float32.  w1, w2: (C, C) Conv1d weights (out, in)."""
    B, C, L = x_ncl.shape

    # Fold eval-mode BatchNorm into per-channel scale & shift, then fold the
    # scale into the weight rows (output channels).  Shifts stay as (C, 1).
    s1 = g1 / jnp.sqrt(v1 + eps)
    b1 = beta1 - m1 * s1
    s2 = g2 / jnp.sqrt(v2 + eps)
    b2 = beta2 - m2 * s2
    w1_eff = (w1 * s1[:, None]).astype(matmul_dtype)
    w2_eff = (w2 * s2[:, None]).astype(matmul_dtype)

    # Choose the L tile: a multiple of 128, no larger than the padded L.
    tl_cap = pl.cdiv(L, 128) * 128
    tl = max(128, min((tl // 128) * 128, tl_cap))
    Lp = pl.cdiv(L, tl) * tl
    x_pad = x_ncl if Lp == L else jnp.pad(x_ncl, ((0, 0), (0, 0), (0, Lp - L)))

    grid = (B, Lp // tl)

    out = pl.pallas_call(
        resblock_kernel,
        out_shape=jax.ShapeDtypeStruct((B, C, Lp), x_ncl.dtype),
        grid_spec=pltpu.PrefetchScalarGridSpec(
            num_scalar_prefetch=0,
            grid=grid,
            in_specs=[
                # x tile: batch dim squeezed, (C, tl) in the kernel.
                pl.BlockSpec((None, C, tl), lambda b, l: (b, 0, l)),
                # Weights & shifts: constant index_map -> stay VMEM-resident.
                pl.BlockSpec((C, C), lambda b, l: (0, 0)),   # W1 (scale-folded)
                pl.BlockSpec((C, C), lambda b, l: (0, 0)),   # W2 (scale-folded)
                pl.BlockSpec((C, 1), lambda b, l: (0, 0)),   # b1 shift
                pl.BlockSpec((C, 1), lambda b, l: (0, 0)),   # b2 shift
            ],
            out_specs=pl.BlockSpec((None, C, tl), lambda b, l: (b, 0, l)),
        ),
        compiler_params=pltpu.CompilerParams(
            dimension_semantics=("parallel", "parallel")),
    )(x_pad, w1_eff, w2_eff, b1.reshape(C, 1), b2.reshape(C, 1))

    return out if Lp == L else out[:, :, :L]


def resblock_ref(x_ncl, w1, w2, g1, beta1, m1, v1, g2, beta2, m2, v2,
                 eps=1e-5):
    """Pure-JAX reference matching the PyTorch module (eval-mode BN)."""
    def bn(h, g, b, m, v):
        return (h - m[None, :, None]) / jnp.sqrt(v[None, :, None] + eps) \
               * g[None, :, None] + b[None, :, None]
    h = jnp.einsum('oc,bcl->bol', w1, x_ncl)
    h = jnp.maximum(bn(h, g1, beta1, m1, v1), 0.0)
    h = jnp.einsum('oc,bcl->bol', w2, h)
    h = bn(h, g2, beta2, m2, v2)
    return h + x_ncl


def _make_params(key, C):
    ks = jax.random.split(key, 10)
    w1 = jax.random.normal(ks[0], (C, C), dtype=jnp.float32) * 0.1
    w2 = jax.random.normal(ks[1], (C, C), dtype=jnp.float32) * 0.1
    g1 = 1.0 + 0.1 * jax.random.normal(ks[2], (C,), dtype=jnp.float32)
    b1 = 0.1 * jax.random.normal(ks[3], (C,), dtype=jnp.float32)
    m1 = 0.1 * jax.random.normal(ks[4], (C,), dtype=jnp.float32)
    v1 = 1.0 + 0.1 * jax.nn.softplus(jax.random.normal(ks[5], (C,)))
    g2 = 1.0 + 0.1 * jax.random.normal(ks[6], (C,), dtype=jnp.float32)
    b2 = 0.1 * jax.random.normal(ks[7], (C,), dtype=jnp.float32)
    m2 = 0.1 * jax.random.normal(ks[8], (C,), dtype=jnp.float32)
    v2 = 1.0 + 0.1 * jax.nn.softplus(jax.random.normal(ks[9], (C,)))
    return w1, w2, g1, b1, m1, v1, g2, b2, m2, v2


if __name__ == "__main__":
    key = jax.random.PRNGKey(0)
    kx, kp = jax.random.split(key, 2)

    B, C = 2, 32
    params = _make_params(kp, C)

    # Case 1: L a multiple of 128 (no padding path).
    L = 256
    x = jax.random.normal(kx, (B, C, L), dtype=jnp.float32)
    out = jax.block_until_ready(resblock_pallas(x, *params))
    ref = resblock_ref(x, *params)
    assert out.shape == (B, C, L)
    assert jnp.allclose(out, ref, atol=1e-4, rtol=1e-4)

    # Case 2: ragged L (exercises the wrapper padding + slice path).
    L2 = 200
    x2 = jax.random.normal(kx, (B, C, L2), dtype=jnp.float32)
    out2 = jax.block_until_ready(resblock_pallas(x2, *params))
    ref2 = resblock_ref(x2, *params)
    assert out2.shape == (B, C, L2)
    assert jnp.allclose(out2, ref2, atol=1e-4, rtol=1e-4)

    print("KERNEL_OK")
</pallas_src>

<mosaic_0001>
module attributes {stable_mosaic.version = 11 : i64} {
  func.func @resblock_kernel(%arg0: i32, %arg1: i32, %arg2: memref<1x32x256xf32, #tpu.memory_space<vmem>>, %arg3: memref<32x32xf32, #tpu.memory_space<vmem>>, %arg4: memref<32x32xf32, #tpu.memory_space<vmem>>, %arg5: memref<32x1xf32, #tpu.memory_space<vmem>>, %arg6: memref<32x1xf32, #tpu.memory_space<vmem>>, %arg7: memref<1x32x256xf32, #tpu.memory_space<vmem>>) attributes {dimension_semantics = [#tpu.dimension_semantics<parallel>, #tpu.dimension_semantics<parallel>], iteration_bounds = array<i64: 2, 1>, scalar_prefetch = 0 : i64, scratch_operands = 0 : i64, tpu.core_type = #tpu.core_type<tc>, window_params = [{transform_indices = @transform_0, window_bounds = array<i64: 1, 32, 256>}, {pipeline_mode = #tpu.pipeline_mode<synchronous>, transform_indices = @transform_1, window_bounds = array<i64: 32, 32>}, {pipeline_mode = #tpu.pipeline_mode<synchronous>, transform_indices = @transform_2, window_bounds = array<i64: 32, 32>}, {pipeline_mode = #tpu.pipeline_mode<synchronous>, transform_indices = @transform_3, window_bounds = array<i64: 32, 1>}, {pipeline_mode = #tpu.pipeline_mode<synchronous>, transform_indices = @transform_4, window_bounds = array<i64: 32, 1>}, {transform_indices = @transform_5, window_bounds = array<i64: 1, 32, 256>}]} {
    %c0 = arith.constant 0 : index
    %c0_0 = arith.constant 0 : index
    %c0_1 = arith.constant 0 : index
    %0 = vector.load %arg2[%c0, %c0_0, %c0_1] : memref<1x32x256xf32, #tpu.memory_space<vmem>>, vector<1x32x256xf32>
    %1 = vector.shape_cast %0 : vector<1x32x256xf32> to vector<32x256xf32>
    %c0_2 = arith.constant 0 : index
    %c0_3 = arith.constant 0 : index
    %2 = vector.load %arg3[%c0_2, %c0_3] : memref<32x32xf32, #tpu.memory_space<vmem>>, vector<32x32xf32>
    %cst = arith.constant dense<0.000000e+00> : vector<32x256xf32>
    %3 = tpu.matmul %2, %1, %cst {dimension_numbers = #tpu.dot_dimension_numbers<[1], [0], [0], [1], [0, 0, 1, 1], [], []>} : vector<32x32xf32>, vector<32x256xf32>, vector<32x256xf32> -> vector<32x256xf32>
    %c0_4 = arith.constant 0 : index
    %c0_5 = arith.constant 0 : index
    %4 = vector.load %arg5[%c0_4, %c0_5] : memref<32x1xf32, #tpu.memory_space<vmem>>, vector<32x1xf32>
    %5 = vector.broadcast %4 : vector<32x1xf32> to vector<32x256xf32>
    %6 = arith.addf %3, %5 : vector<32x256xf32>
    %cst_6 = arith.constant 0.000000e+00 : f32
    %7 = vector.broadcast %cst_6 : f32 to vector<32x256xf32>
    %8 = arith.maximumf %6, %7 : vector<32x256xf32>
    %c0_7 = arith.constant 0 : index
    %c0_8 = arith.constant 0 : index
    %9 = vector.load %arg4[%c0_7, %c0_8] : memref<32x32xf32, #tpu.memory_space<vmem>>, vector<32x32xf32>
    %cst_9 = arith.constant dense<0.000000e+00> : vector<32x256xf32>
    %10 = tpu.matmul %9, %8, %cst_9 {dimension_numbers = #tpu.dot_dimension_numbers<[1], [0], [0], [1], [0, 0, 1, 1], [], []>} : vector<32x32xf32>, vector<32x256xf32>, vector<32x256xf32> -> vector<32x256xf32>
    %c0_10 = arith.constant 0 : index
    %c0_11 = arith.constant 0 : index
    %11 = vector.load %arg6[%c0_10, %c0_11] : memref<32x1xf32, #tpu.memory_space<vmem>>, vector<32x1xf32>
    %12 = vector.broadcast %11 : vector<32x1xf32> to vector<32x256xf32>
    %13 = arith.addf %10, %12 : vector<32x256xf32>
    %14 = arith.addf %13, %1 : vector<32x256xf32>
    %c0_12 = arith.constant 0 : index
    %c0_13 = arith.constant 0 : index
    %c0_14 = arith.constant 0 : index
    %15 = vector.load %arg7[%c0_12, %c0_13, %c0_14] : memref<1x32x256xf32, #tpu.memory_space<vmem>>, vector<1x32x256xf32>
    %16 = vector.shape_cast %15 : vector<1x32x256xf32> to vector<32x256xf32>
    %17 = vector.shape_cast %14 : vector<32x256xf32> to vector<1x32x256xf32>
    tpu.vector_store %arg7[%c0_12, %c0_13, %c0_14], %17 {strides = array<i32>} : memref<1x32x256xf32, #tpu.memory_space<vmem>>, vector<1x32x256xf32>,
    return
  }
  func.func @transform_0(%arg0: i32, %arg1: i32) -> (i32, i32, i32) {
    %c0_i32 = arith.constant 0 : i32
    %c0_i32_0 = arith.constant 0 : i32
    return %arg0, %c0_i32, %arg1 : i32, i32, i32
  }
  func.func @transform_1(%arg0: i32, %arg1: i32) -> (i32, i32) {
    %c0_i32 = arith.constant 0 : i32
    %c0_i32_0 = arith.constant 0 : i32
    %c0_i32_1 = arith.constant 0 : i32
    return %c0_i32, %c0_i32_0 : i32, i32
  }
  func.func @transform_2(%arg0: i32, %arg1: i32) -> (i32, i32) {
    %c0_i32 = arith.constant 0 : i32
    %c0_i32_0 = arith.constant 0 : i32
    %c0_i32_1 = arith.constant 0 : i32
    return %c0_i32, %c0_i32_0 : i32, i32
  }
  func.func @transform_3(%arg0: i32, %arg1: i32) -> (i32, i32) {
    %c0_i32 = arith.constant 0 : i32
    %c0_i32_0 = arith.constant 0 : i32
    %c0_i32_1 = arith.constant 0 : i32
    return %c0_i32, %c0_i32_0 : i32, i32
  }
  func.func @transform_4(%arg0: i32, %arg1: i32) -> (i32, i32) {
    %c0_i32 = arith.constant 0 : i32
    %c0_i32_0 = arith.constant 0 : i32
    %c0_i32_1 = arith.constant 0 : i32
    return %c0_i32, %c0_i32_0 : i32, i32
  }
  func.func @transform_5(%arg0: i32, %arg1: i32) -> (i32, i32, i32) {
    %c0_i32 = arith.constant 0 : i32
    %c0_i32_0 = arith.constant 0 : i32
    return %arg0, %c0_i32, %arg1 : i32, i32, i32
  }
}

</mosaic_0001>

<bundles_post_ra>
// kernel: resblock_pallas.1
= control target key start
LH: loop header
LB: loop body
LE: loop exit
PB: predicated region body
PF: predicated region fallthrough
CT: control target
= control target key end

     0   :  { %10 = vsyncpa [#allocation3], 0  ;;  %s1062_s0 = inlined_call_operand.vmem [shape: f32[2,32,256], index: 0, kind: input, shape index: {}]   ;;  %s1063_s1 = inlined_call_operand.vmem [shape: f32[32,32], index: 1, kind: input, shape index: {}]   ;;  %s1064_s2 = inlined_call_operand.vmem [shape: f32[32,32], index: 2, kind: input, shape index: {}]   ;;  %s1065_s3 = inlined_call_operand.vmem [shape: f32[32,1], index: 3, kind: input, shape index: {}]   ;;  %s1066_s4 = inlined_call_operand.vmem [shape: f32[32,1], index: 4, kind: input, shape index: {}]   ;;  %s1067_s5 = inlined_call_operand.hbm [shape: f32[2,32,256], index: 5, kind: output, shape index: {}]  }
   0x1   :  { %12 = vsyncpa [#allocation3 + $0x1], 0  ;;  %s837_s18 = smov 0   ;;  %s839_s19 = smov 0  }
   0x2   :  { %s841_s20 = smov 0   ;;  %s843_s21 = smov 0  }
   0x3   :  { %s845_s22 = smov 0   ;;  %s847_s23 = smov 0  }
   0x4 LB: > { %s640_s24 = sadd.s32 4294967295, %s800_s23   ;;  %s641_s25 = sadd.s32 4294967294, %s800_s23   ;;  %s800_s23 = sphi %s847_s23, %s18_s23   ;;  %s796_s22 = sphi %s845_s22, %s1074_s22   ;;  %s792_s21 = sphi %s843_s21, %s1073_s21   ;;  %s788_s20 = sphi %s841_s20, %s1072_s20   ;;  %s784_s19 = sphi %s839_s19, %s1071_s19   ;;  %s780_s18 = sphi %s837_s18, %s1070_s18  }
   0x5   : > { %s30_s26 = sadd.s32 1, %s796_s22  ;;  %s151_s27 = sadd.s32 1, %s788_s20 }
   0x6   : > { %p32_p0 = scmp.ge.s32.totalorder %s30_s26, 2  ;;  %p161_p1 = scmp.ne.s32.totalorder %s788_s20, %s784_s19 }
   0x7   : > { %p162_p2 = scmp.eq.s32.totalorder %s640_s24, 1  ;;  %p167_p3 = scmp.ne.s32.totalorder %s784_s19, %s780_s18 }
   0x8   : > { %s1076_s26 = smov (%p32_p0, %s30_s26), 0  ;;  %p168_p5 = scmp.eq.s32.totalorder %s641_s25, 1 }
   0x9   : > { %p877_p4 = por %p162_p2, %p161_p1  ;;  %s146_s29 = ssub.s32 %s796_s22, %s1076_s26 }
   0xa   : > { %p644_p6 = scmp.ge.s32.totalorder %s800_s23, 1  ;;  %p149_p7 = scmp.eq.s32.totalorder %s146_s29, 0 }
   0xb   : > { %p884_p8 = por %p168_p5, %p167_p3  ;;  %p211_p9 = scmp.lt.s32.totalorder %s800_s23, 3 }
   0xc   : > { %s890_s6 = scalar_select %p149_p7, %s788_s20, %s151_s27  }
   0xd   : > { %p212_p10 = pnand %p644_p6, %p211_p9 }
   0xe   : > { %p244_p11 = scmp.lt.s32.totalorder (!%p212_p10), %s792_s21, 1  ;;  %s240_s14 = sand.u32 (!%p212_p10), 1, %s784_s19  }
   0xf   : > { %215 = sbr.rel (%p212_p10) target bundleno = 478 (0x1de), region = 40  ;;  %s645_s15 = sshll.u32 (!%p212_p10), %s240_s14, 6 }
  0x10   : > { %s989_s16 = scalar_lea.vmem (!%p212_p10), [#allocation2], %s645_s15  ;;  %s804_s8 = smov (!%p212_p10), [#allocation2]  }
  0x11   : > { %s561_s24 = sshll.u32 (!%p212_p10), %s989_s16, 4  ;;  %s728_s9 = sshll.u32 (!%p212_p10), %s804_s8, 4  ;;  %s1010_s24 = int_to_ptr.vmem [resolvable:$true] %s561_s24  ;;  %s729_s9 = int_to_ptr.vmem [resolvable:$false] %s728_s9 }
  0x12   : > { %s724_s7 = scalar_lea.vmem (!%p212_p10), %s1010_s24, 1024  ;;  %s730_s10 = scalar_lea.vmem (!%p212_p10), %s729_s9, 2048 }
  0x13   : > { %p725_p12 = scmp.ne.s32.totalorder (!%p212_p10), %s1010_s24, %s724_s7  ;;  %p731_p1 = scmp.lt.s32.totalorder (!%p212_p10), %s1010_s24, %s729_s9 }
  0x14   : > { %v802_v0 = vmov 0.0   ;;  %v267_v1 = vld [vmem:[%s1065_s3 + $0x8] sm:$0xff]  ;;  %v269_v2 = vld [vmem:[%s1065_s3 + $0x18] sm:$0xff]  ;;  %s245_s11 = scalar_select %p244_p11, %s792_s21, 1  ;;  %v803_v3 = vmov 0   ;;  %v266_v4 = vld [vmem:[%s1065_s3] sm:$0xff] }
  0x15   : > { %367 = vmatprep.mubr.f32.mxu0 %v802_v0  ;;  %504 = vmatprep.mubr.f32.mxu1 %v802_v0  ;;  %v268_v5 = vld [vmem:[%s1065_s3 + $0x10] sm:$0xff]  ;;  %v405_v11 = vld [vmem:[%s1066_s4 + $0x8] sm:$0xff]  ;;  %v404_v13 = vld [vmem:[%s1066_s4] sm:$0xff]  ;;  %vm290_vm0 = vcmask 261120   ;;  %p726_p13 = pnand %p725_p12, %p877_p4  ;;  %p732_p2 = scmp.lt.s32.totalorder %s730_s10, %s724_s7 }
  0x16   : > { %723 = vset.pattern.permute.xlu1 %v803_v3  ;;  %722 = vset.pattern.permute.xlu0 %v803_v3  ;;  %s661_s12 = sshll.u32 %s245_s11, 6  ;;  %v262_v16 = vld [vmem:[%s1063_s1] sm:$0xff]  ;;  %v407_v17 = vld [vmem:[%s1066_s4 + $0x18] sm:$0xff]  ;;  %v406_v18 = vld [vmem:[%s1066_s4 + $0x10] sm:$0xff] }
  0x17   : > { %277 = vperm.xlu1 %723, %v267_v1   ;;  %287 = vperm.xlu0 %722, %v269_v2   ;;  %s251_s17 = scalar_lea.vmem %s1062_s0, %s661_s12  ;;  %v263_v19 = vld [vmem:[%s1063_s1 + $0x8] sm:$0xff]  ;;  %v264_v20 = vld [vmem:[%s1063_s1 + $0x10] sm:$0xff]  ;;  %v265_v21 = vld [vmem:[%s1063_s1 + $0x18] sm:$0xff]  ;;  %p727_p0 = pneg %p726_p13 }
  0x18   : > { %v911_v6 = vld [vmem:[%s251_s17 + $0x38] sm:$0xff]  ;;  %v913_v7 = vld [vmem:[%s251_s17 + $0x30] sm:$0xff]  ;;  %v915_v8 = vld [vmem:[%s251_s17 + $0x28] sm:$0xff]  ;;  %p733_p3 = por %p732_p2, %p731_p1 }
  0x19   : > { %327 = vmatprep.subr.mxu0 %v911_v6  ;;  %v918_v9 = vld [vmem:[%s251_s17 + $0x20] sm:$0xff]  ;;  %v921_v10 = vld [vmem:[%s251_s17 + $0x18] sm:$0xff]  ;;  %v927_v12 = vld [vmem:[%s251_s17 + $0x10] sm:$0xff] }
  0x1a   : > { %328 = vmatpush1.msra.mxu0 %v913_v7  ;;  %v933_v14 = vld [vmem:[%s251_s17 + $0x8] sm:$0xff]  ;;  %v936_v15 = vld [vmem:[%s251_s17] sm:$0xff]  ;;  %v402_v52 = vld [vmem:[%s1064_s2 + $0x10] sm:$0xff]  ;;  %s662_s17 = sshll.u32 %s792_s21, 10  ;;  %s1017_s21 = scalar_lea.sflag [#allocation3], %s240_s14 }
  0x1b   : > { %272 = vperm.xlu1 %723, %v266_v4   ;;  %282 = vperm.xlu0 %722, %v268_v5   ;;  %v400_v50 = vld [vmem:[%s1064_s2] sm:$0xff]  ;;  %v401_v51 = vld [vmem:[%s1064_s2 + $0x8] sm:$0xff]  ;;  %v403_v53 = vld [vmem:[%s1064_s2 + $0x18] sm:$0xff]  ;;  %s1008_s29 = scalar_lea.hbm %s1067_s5, %s662_s17  ;;  %p734_p5 = pnand %p733_p3, %p727_p0 }
  0x1c   : > { %329 = vmatprep.subr.mxu0 %v915_v8 }
  0x1d   : > { %330 = vmatpush1.msra.mxu0 %v918_v9 }
  0x1e   : > { %331 = vmatprep.subr.mxu0 %v921_v10 }
  0x1f   : > { %415 = vperm.xlu1 %723, %v405_v11   ;;  %332 = vmatpush1.msra.mxu0 %v927_v12 }
  0x20   : > { %410 = vperm.xlu0 %722, %v404_v13   ;;  %333 = vmatprep.subr.mxu0 %v933_v14 }
  0x21   : > { %334 = vmatpush1.msra.mxu0 %v936_v15 }
  0x22   : > { %648 = vmatmul.mubr.msk.f32.vlgmr.msra.gmra.mxu0 %vm290_vm0, %v262_v16 }
  0x23   : > { %425 = vperm.xlu1 %723, %v407_v17   ;;  %373 = vmatprep.mubr.f32.mxu0 %v802_v0 }
  0x24   : > { %420 = vperm.xlu0 %722, %v406_v18  }
  0x26   : > { %649 = vmatmul.mubr.msk.f32.gmra.mxu0 %vm290_vm0, %v263_v19 }
  0x27   : > { %379 = vmatprep.mubr.f32.mxu0 %v802_v0 }
  0x2a   : > { %650 = vmatmul.mubr.msk.f32.gmra.mxu0 %vm290_vm0, %v264_v20 }
  0x2b   : > { %385 = vmatprep.mubr.f32.mxu0 %v802_v0 }
  0x2e   : > { %651 = vmatmul.mubr.msk.f32.gmra.mxu0 %vm290_vm0, %v265_v21 }
  0x92   : > { %v288_v26 = vpop.permute.xlu0 %287  ;;  %v278_v29 = vpop.permute.xlu1 %277 }
  0x96   : > { %v283_v31 = vpop.permute.xlu0 %282  ;;  %v273_v37 = vpop.permute.xlu1 %272 }
  0x9a   : > { %v416_v60 = vpop.permute.xlu1 %415 }
  0x9b   : > { %v411_v54 = vpop.permute.xlu0 %410 }
  0x9e   : > { %v426_v16 = vpop.permute.xlu1 %425 }
  0x9f   : > { %v421_v3 = vpop.permute.xlu0 %420 }
  0xe2   : > { %v369_v22 = vpop.f32.mrf.mxu0 }
  0xe3   : > { %v370_v44 = vadd.f32 %v369_v22, %v273_v37 }
  0xe4   : > { %v371_v23 = vpop.f32.mrf.mxu0 }
  0xe5   : > { %v372_v42 = vadd.f32 %v371_v23, %v273_v37  ;;  %v392_v49 = vmax.f32 %v370_v44, 0.0 }
  0xe6   : > { %v375_v24 = vpop.f32.mrf.mxu0 }
  0xe7   : > { %v376_v40 = vadd.f32 %v375_v24, %v278_v29  ;;  %v393_v48 = vmax.f32 %v372_v42, 0.0 }
  0xe8   : > { %v377_v25 = vpop.f32.mrf.mxu0 }
  0xe9   : > { %v378_v38 = vadd.f32 %v377_v25, %v278_v29  ;;  %v394_v47 = vmax.f32 %v376_v40, 0.0 }
  0xea   : > { %v381_v27 = vpop.f32.mrf.mxu0 }
  0xeb   : > { %v382_v36 = vadd.f32 %v381_v27, %v283_v31  ;;  %v395_v46 = vmax.f32 %v378_v38, 0.0 }
  0xec   : > { %v383_v28 = vpop.f32.mrf.mxu0 }
  0xed   : > { %v384_v34 = vadd.f32 %v383_v28, %v283_v31  ;;  %v396_v45 = vmax.f32 %v382_v36, 0.0 }
  0xee   : > { %v387_v30 = vpop.f32.mrf.mxu0 }
  0xef   : > { %v388_v32 = vadd.f32 %v387_v30, %v288_v26  ;;  %v397_v43 = vmax.f32 %v384_v34, 0.0 }
  0xf0   : > { %v389_v33 = vpop.f32.mrf.mxu0 }
  0xf1   : > { %v390_v35 = vadd.f32 %v389_v33, %v288_v26  ;;  %v398_v41 = vmax.f32 %v388_v32, 0.0 }
  0xf3   : > { %v399_v39 = vmax.f32 %v390_v35, 0.0 }
  0xf5   : > { %464 = vmatprep.subr.mxu1 %v399_v39 }
  0xf6   : > { %465 = vmatpush1.msra.mxu1 %v398_v41 }
  0xf7   : > { %466 = vmatprep.subr.mxu1 %v397_v43 }
  0xf8   : > { %467 = vmatpush1.msra.mxu1 %v396_v45 }
  0xf9   : > { %468 = vmatprep.subr.mxu1 %v395_v46 }
  0xfa   : > { %469 = vmatpush1.msra.mxu1 %v394_v47 }
  0xfb   : > { %470 = vmatprep.subr.mxu1 %v393_v48 }
  0xfc   : > { %471 = vmatpush1.msra.mxu1 %v392_v49 }
  0xfd   : > { %652 = vmatmul.mubr.msk.f32.vlgmr.msra.gmra.mxu1 %vm290_vm0, %v400_v50 }
  0xfe   : > { %510 = vmatprep.mubr.f32.mxu1 %v802_v0 }
 0x101   : > { %653 = vmatmul.mubr.msk.f32.gmra.mxu1 %vm290_vm0, %v401_v51 }
 0x102   : > { %516 = vmatprep.mubr.f32.mxu1 %v802_v0 }
 0x105   : > { %654 = vmatmul.mubr.msk.f32.gmra.mxu1 %vm290_vm0, %v402_v52 }
 0x106   : > { %522 = vmatprep.mubr.f32.mxu1 %v802_v0 }
 0x109   : > { %655 = vmatmul.mubr.msk.f32.gmra.mxu1 %vm290_vm0, %v403_v53 }
 0x1bd   : > { %v506_v55 = vpop.f32.mrf.mxu1 }
 0x1be   : > { %v507_v56 = vadd.f32 %v506_v55, %v411_v54 }
 0x1bf   : > { %v508_v57 = vpop.f32.mrf.mxu1 }
 0x1c0   : > { %v529_v58 = vadd.f32 %v507_v56, %v936_v15  ;;  %v509_v59 = vadd.f32 %v508_v57, %v411_v54 }
 0x1c1   : > { %v512_v61 = vpop.f32.mrf.mxu1 }
 0x1c2   : > { %537 = vst [vmem:[%s989_s16] sm:$0xff] %v529_v58  ;;  %v530_v62 = vadd.f32 %v509_v59, %v933_v14  ;;  %v513_v63 = vadd.f32 %v512_v61, %v416_v60 }
 0x1c3   : > { %v514_v0 = vpop.f32.mrf.mxu1 }
 0x1c4   : > { %538 = vst [vmem:[%s989_s16 + $0x8] sm:$0xff] %v530_v62  ;;  %v531_v1 = vadd.f32 %v513_v63, %v927_v12  ;;  %v515_v2 = vadd.f32 %v514_v0, %v416_v60 }
 0x1c5   : > { %v518_v4 = vpop.f32.mrf.mxu1 }
 0x1c6   : > { %539 = vst [vmem:[%s989_s16 + $0x10] sm:$0xff] %v531_v1  ;;  %v532_v5 = vadd.f32 %v515_v2, %v921_v10  ;;  %v519_v11 = vadd.f32 %v518_v4, %v421_v3 }
 0x1c7   : > { %v520_v13 = vpop.f32.mrf.mxu1 }
 0x1c8   : > { %540 = vst [vmem:[%s989_s16 + $0x18] sm:$0xff] %v532_v5  ;;  %v533_v14 = vadd.f32 %v519_v11, %v918_v9  ;;  %v521_v15 = vadd.f32 %v520_v13, %v421_v3 }
 0x1c9   : > { %v524_v12 = vpop.f32.mrf.mxu1 }
 0x1ca   : > { %541 = vst [vmem:[%s989_s16 + $0x20] sm:$0xff] %v533_v14  ;;  %v534_v17 = vadd.f32 %v521_v15, %v915_v8  ;;  %v525_v18 = vadd.f32 %v524_v12, %v426_v16 }
 0x1cb   : > { %v526_v19 = vpop.f32.mrf.mxu1 }
 0x1cc   : > { %542 = vst [vmem:[%s989_s16 + $0x28] sm:$0xff] %v534_v17  ;;  %v535_v10 = vadd.f32 %v525_v18, %v913_v7  ;;  %v527_v20 = vadd.f32 %v526_v19, %v426_v16 }
 0x1ce   : > { %543 = vst [vmem:[%s989_s16 + $0x30] sm:$0xff] %v535_v10  ;;  %v536_v8 = vadd.f32 %v527_v20, %v911_v6 }
 0x1d0   : > { %544 = vst [vmem:[%s989_s16 + $0x38] sm:$0xff] %v536_v8 }
 0x1d1   : > { %737 = shalt.err (!%p734_p5)
}
 0x1d2   : > { %s738_s11 = scalar_lea.hbm %s1008_s29, 1024  ;;  %s742_s14 = scalar_lea.hbm %s1067_s5, 2048 }
 0x1d3   : > { %p739_p6 = scmp.ne.s32.totalorder %s1008_s29, %s738_s11  ;;  %p743_p10 = scmp.lt.s32.totalorder %s1008_s29, %s1067_s5 }
 0x1d4   : > { %p744_p11 = scmp.lt.s32.totalorder %s742_s14, %s738_s11 }
 0x1d5   : > { %p740_p7 = pnand %p739_p6, %p877_p4 }
 0x1d6   : > { %p745_p12 = por %p744_p11, %p743_p10 }
 0x1d7   : > { %p741_p9 = pneg %p740_p7 }
 0x1d9   : > { %p746_p13 = pnand %p745_p12, %p741_p9 }
 0x1db   : > { %749 = shalt.err (!%p746_p13)
}
 0x1dc   : > { %s805_s17 = smov 256   ;;  %s806_s25 = smov 16  }
 0x1dd   : > { %663 = dma.vmem_to_hbm [thread:$0]  (%p877_p4), %s1010_s24, 1024, %s1008_s29, %s1017_s21, %s805_s17, %s805_s17, %s806_s25  }
 0x1de PF: > { %p669_p0 = scmp.ge.s32.totalorder %s800_s23, 2  ;;  %s576_s27 = sand.u32 1, %s780_s18  }
 0x1df   : > { %s577_s7 = scalar_lea.sflag [#allocation3], %s576_s27 }
 0x1e0   : > { %p666_p1 = pnand %p669_p0, %p884_p8 }
 0x1e2   : > { %p667_p2 = pneg %p666_p1 }
 0x1e4   : > { %775 = dma.done.wait (%p667_p2), %s577_s7, 1024  }
 0x1e5   : > { %777 = vsyncadd (%p667_p2), %s577_s7, 4294966272  ;;  %s18_s23 = sadd.s32 1, %s800_s23   ;;  %s1070_s18 = smov %s784_s19 }
 0x1e6   : > { %p15_p3 = scmp.ge.s32.totalorder %s18_s23, 4   ;;  %s1071_s19 = smov %s788_s20 }
 0x1e7   : > { %s1072_s20 = smov %s890_s6  ;;  %s1073_s21 = smov %s796_s22 }
 0x1e8   : > { %s1074_s22 = smov %s1076_s26  ;;  %17 = sbr.rel (!%p15_p3) target bundleno = 4 (0x4), region = 75 }
 0x1ed   :  { %582 = vsyncpa [#allocation3], 1 }
 0x1ee   :  { %584 = vsyncpa [#allocation3 + $0x1], 1 }

</bundles_post_ra>
